<compile_context>
chip_gen: v7x
topology: tpu7x:2x2x1
jax: 0.10.0
libtpu: 0.0.40
codegen_flags: <defaults>
</compile_context>

<pallas_src>
import jax
import jax.numpy as jnp
from jax.experimental import pallas as pl
from jax.experimental.pallas import tpu as pltpu


def mlp_kernel(x_ref, w1_ref, b1_ref, w2_ref, b2_ref, o_ref):
    # First Linear (MXU, bf16 in / f32 accumulate) + bias + ReLU (VPU).
    h = jnp.dot(x_ref[...], w1_ref[...], preferred_element_type=jnp.float32)
    h = jnp.maximum(h + b1_ref[...], 0.0)
    # Second Linear: explicit bf16 cast of the f32 accumulator before the MXU.
    y = jnp.dot(h.astype(jnp.bfloat16), w2_ref[...],
                preferred_element_type=jnp.float32)
    o_ref[...] = (y + b2_ref[...]).astype(o_ref.dtype)


def _round_up(x, m):
    return ((x + m - 1) // m) * m


def my_sequential_forward(x, w1, b1, w2, b2, *, batch_tile=256):
    """Fused Linear -> ReLU -> Linear.

    x: [B, D_in] (any float dtype); w1: [D_in, D_hid]; b1: [1, D_hid];
    w2: [D_hid, D_out]; b2: [1, D_out].  Returns f32 [B, D_out].
    """
    batch, d_in = x.shape
    d_hidden = w1.shape[1]
    d_out = w2.shape[1]

    # --- dtype: bf16 operands for the MXU, f32 biases / accumulation --------
    xb = x.astype(jnp.bfloat16)
    w1b = w1.astype(jnp.bfloat16)
    w2b = w2.astype(jnp.bfloat16)
    b1f = b1.astype(jnp.float32).reshape(1, d_hidden)
    b2f = b2.astype(jnp.float32).reshape(1, d_out)

    # --- pad contraction dim K to a multiple of 256 (clean MXU passes) ------
    k_pad = _round_up(d_in, 256)
    if k_pad != d_in:
        xb = jnp.pad(xb, ((0, 0), (0, k_pad - d_in)))
        w1b = jnp.pad(w1b, ((0, k_pad - d_in), (0, 0)))

    # --- pad hidden dim to a lane multiple (already 256 in the example) -----
    h_pad = _round_up(d_hidden, 128)
    if h_pad != d_hidden:
        w1b = jnp.pad(w1b, ((0, 0), (0, h_pad - d_hidden)))
        b1f = jnp.pad(b1f, ((0, 0), (0, h_pad - d_hidden)))
        w2b = jnp.pad(w2b, ((0, h_pad - d_hidden), (0, 0)))

    # --- lane-dense output: pad N from 10 -> 128, slice back afterwards -----
    n_pad = _round_up(d_out, 128)
    if n_pad != d_out:
        w2b = jnp.pad(w2b, ((0, 0), (0, n_pad - d_out)))
        b2f = jnp.pad(b2f, ((0, 0), (0, n_pad - d_out)))

    # --- batch grid: tile + pipeline only once the batch is big enough ------
    if batch >= 512:
        tb = batch_tile
        b_pad = _round_up(batch, tb)
        if b_pad != batch:
            xb = jnp.pad(xb, ((0, b_pad - batch), (0, 0)))
    else:
        tb = batch          # single grid step; block == full array (OK < 8)
        b_pad = batch
    grid = (b_pad // tb,)

    out = pl.pallas_call(
        mlp_kernel,
        out_shape=jax.ShapeDtypeStruct((b_pad, n_pad), jnp.float32),
        grid=grid,
        in_specs=[
            pl.BlockSpec((tb, k_pad), lambda i: (i, 0)),     # x tile
            pl.BlockSpec((k_pad, h_pad), lambda i: (0, 0)),  # w1 (resident)
            pl.BlockSpec((1, h_pad), lambda i: (0, 0)),      # b1
            pl.BlockSpec((h_pad, n_pad), lambda i: (0, 0)),  # w2 (resident)
            pl.BlockSpec((1, n_pad), lambda i: (0, 0)),      # b2
        ],
        out_specs=pl.BlockSpec((tb, n_pad), lambda i: (i, 0)),
        compiler_params=pltpu.CompilerParams(
            dimension_semantics=("parallel",)),
    )(xb, w1b, b1f, w2b, b2f)

    return out[:batch, :d_out]


def reference_forward(x, w1, b1, w2, b2):
    """Pure-JAX reference with the same bf16-in / f32-accumulate recipe."""
    xb = x.astype(jnp.bfloat16)
    w1b = w1.astype(jnp.bfloat16)
    w2b = w2.astype(jnp.bfloat16)
    h = jnp.dot(xb, w1b, preferred_element_type=jnp.float32) + b1
    h = jnp.maximum(h, 0.0)
    y = jnp.dot(h.astype(jnp.bfloat16), w2b,
                preferred_element_type=jnp.float32) + b2
    return y


if __name__ == "__main__":
    # Shapes implied by the d2l example: Linear(784,256) -> ReLU -> Linear(256,10)
    B, D_IN, D_HID, D_OUT = 2, 784, 256, 10

    key = jax.random.PRNGKey(0)
    k_x, k_w1, k_b1, k_w2, k_b2 = jax.random.split(key, 5)

    x = jax.random.uniform(k_x, (B, D_IN), dtype=jnp.float32)

    # PyTorch-Linear-style uniform init; weights stored [in, out].
    bound1 = 1.0 / (D_IN ** 0.5)
    w1 = jax.random.uniform(k_w1, (D_IN, D_HID), minval=-bound1, maxval=bound1,
                            dtype=jnp.float32)
    b1 = jax.random.uniform(k_b1, (1, D_HID), minval=-bound1, maxval=bound1,
                            dtype=jnp.float32)
    bound2 = 1.0 / (D_HID ** 0.5)
    w2 = jax.random.uniform(k_w2, (D_HID, D_OUT), minval=-bound2, maxval=bound2,
                            dtype=jnp.float32)
    b2 = jax.random.uniform(k_b2, (1, D_OUT), minval=-bound2, maxval=bound2,
                            dtype=jnp.float32)

    out = my_sequential_forward(x, w1, b1, w2, b2)
    out = jax.block_until_ready(out)

    ref = reference_forward(x, w1, b1, w2, b2)
    ref_f32 = jnp.maximum(x @ w1 + b1, 0.0) @ w2 + b2

    assert out.shape == (B, D_OUT), out.shape
    assert jnp.allclose(out, ref, atol=1e-2, rtol=1e-2), "mismatch vs bf16 reference"
    assert jnp.allclose(out, ref_f32, atol=5e-2, rtol=5e-2), "mismatch vs f32 reference"

    print("KERNEL_OK")
</pallas_src>

<mosaic_0001>
module attributes {stable_mosaic.version = 11 : i64} {
  func.func @mlp_kernel(%arg0: i32, %arg1: memref<2x1024xbf16, #tpu.memory_space<vmem>>, %arg2: memref<1024x256xbf16, #tpu.memory_space<vmem>>, %arg3: memref<1x256xf32, #tpu.memory_space<vmem>>, %arg4: memref<256x128xbf16, #tpu.memory_space<vmem>>, %arg5: memref<1x128xf32, #tpu.memory_space<vmem>>, %arg6: memref<2x128xf32, #tpu.memory_space<vmem>>) attributes {dimension_semantics = [#tpu.dimension_semantics<parallel>], iteration_bounds = array<i64: 1>, scalar_prefetch = 0 : i64, scratch_operands = 0 : i64, tpu.core_type = #tpu.core_type<tc>, window_params = [{transform_indices = @transform_0, window_bounds = array<i64: 2, 1024>}, {pipeline_mode = #tpu.pipeline_mode<synchronous>, transform_indices = @transform_1, window_bounds = array<i64: 1024, 256>}, {pipeline_mode = #tpu.pipeline_mode<synchronous>, transform_indices = @transform_2, window_bounds = array<i64: 1, 256>}, {pipeline_mode = #tpu.pipeline_mode<synchronous>, transform_indices = @transform_3, window_bounds = array<i64: 256, 128>}, {pipeline_mode = #tpu.pipeline_mode<synchronous>, transform_indices = @transform_4, window_bounds = array<i64: 1, 128>}, {transform_indices = @transform_5, window_bounds = array<i64: 2, 128>}]} {
    %c0 = arith.constant 0 : index
    %c0_0 = arith.constant 0 : index
    %0 = vector.load %arg1[%c0, %c0_0] : memref<2x1024xbf16, #tpu.memory_space<vmem>>, vector<2x1024xbf16>
    %c0_1 = arith.constant 0 : index
    %c0_2 = arith.constant 0 : index
    %1 = vector.load %arg2[%c0_1, %c0_2] : memref<1024x256xbf16, #tpu.memory_space<vmem>>, vector<1024x256xbf16>
    %cst = arith.constant dense<0.000000e+00> : vector<2x256xf32>
    %2 = tpu.matmul %0, %1, %cst {dimension_numbers = #tpu.dot_dimension_numbers<[1], [0], [0], [1], [0, 0, 1, 1], [], []>} : vector<2x1024xbf16>, vector<1024x256xbf16>, vector<2x256xf32> -> vector<2x256xf32>
    %c0_3 = arith.constant 0 : index
    %c0_4 = arith.constant 0 : index
    %3 = vector.load %arg3[%c0_3, %c0_4] : memref<1x256xf32, #tpu.memory_space<vmem>>, vector<1x256xf32>
    %4 = vector.broadcast %3 : vector<1x256xf32> to vector<2x256xf32>
    %5 = arith.addf %2, %4 : vector<2x256xf32>
    %cst_5 = arith.constant 0.000000e+00 : f32
    %6 = vector.broadcast %cst_5 : f32 to vector<2x256xf32>
    %7 = arith.maximumf %5, %6 : vector<2x256xf32>
    %8 = arith.truncf %7 : vector<2x256xf32> to vector<2x256xbf16>
    %c0_6 = arith.constant 0 : index
    %c0_7 = arith.constant 0 : index
    %9 = vector.load %arg4[%c0_6, %c0_7] : memref<256x128xbf16, #tpu.memory_space<vmem>>, vector<256x128xbf16>
    %cst_8 = arith.constant dense<0.000000e+00> : vector<2x128xf32>
    %10 = tpu.matmul %8, %9, %cst_8 {dimension_numbers = #tpu.dot_dimension_numbers<[1], [0], [0], [1], [0, 0, 1, 1], [], []>} : vector<2x256xbf16>, vector<256x128xbf16>, vector<2x128xf32> -> vector<2x128xf32>
    %c0_9 = arith.constant 0 : index
    %c0_10 = arith.constant 0 : index
    %11 = vector.load %arg5[%c0_9, %c0_10] : memref<1x128xf32, #tpu.memory_space<vmem>>, vector<1x128xf32>
    %12 = vector.broadcast %11 : vector<1x128xf32> to vector<2x128xf32>
    %13 = arith.addf %10, %12 : vector<2x128xf32>
    %c0_11 = arith.constant 0 : index
    %c0_12 = arith.constant 0 : index
    %14 = vector.load %arg6[%c0_11, %c0_12] : memref<2x128xf32, #tpu.memory_space<vmem>>, vector<2x128xf32>
    tpu.vector_store %arg6[%c0_11, %c0_12], %13 {strides = array<i32>} : memref<2x128xf32, #tpu.memory_space<vmem>>, vector<2x128xf32>,
    return
  }
  func.func @transform_0(%arg0: i32) -> (i32, i32) {
    %c0_i32 = arith.constant 0 : i32
    %c0_i32_0 = arith.constant 0 : i32
    return %arg0, %c0_i32 : i32, i32
  }
  func.func @transform_1(%arg0: i32) -> (i32, i32) {
    %c0_i32 = arith.constant 0 : i32
    %c0_i32_0 = arith.constant 0 : i32
    %c0_i32_1 = arith.constant 0 : i32
    return %c0_i32, %c0_i32_0 : i32, i32
  }
  func.func @transform_2(%arg0: i32) -> (i32, i32) {
    %c0_i32 = arith.constant 0 : i32
    %c0_i32_0 = arith.constant 0 : i32
    %c0_i32_1 = arith.constant 0 : i32
    return %c0_i32, %c0_i32_0 : i32, i32
  }
  func.func @transform_3(%arg0: i32) -> (i32, i32) {
    %c0_i32 = arith.constant 0 : i32
    %c0_i32_0 = arith.constant 0 : i32
    %c0_i32_1 = arith.constant 0 : i32
    return %c0_i32, %c0_i32_0 : i32, i32
  }
  func.func @transform_4(%arg0: i32) -> (i32, i32) {
    %c0_i32 = arith.constant 0 : i32
    %c0_i32_0 = arith.constant 0 : i32
    %c0_i32_1 = arith.constant 0 : i32
    return %c0_i32, %c0_i32_0 : i32, i32
  }
  func.func @transform_5(%arg0: i32) -> (i32, i32) {
    %c0_i32 = arith.constant 0 : i32
    %c0_i32_0 = arith.constant 0 : i32
    return %arg0, %c0_i32 : i32, i32
  }
}

</mosaic_0001>

<bundles_post_ra>
// kernel: tpu_custom_call.1
= control target key start
LH: loop header
LB: loop body
LE: loop exit
PB: predicated region body
PF: predicated region fallthrough
CT: control target
= control target key end

     0   :  { %10 = vsyncpa [#allocation3], 0  ;;  %s1859_s0 = inlined_call_operand.hbm [shape: bf16[2,1024], index: 0, kind: input, shape index: {}]   ;;  %s1860_s1 = inlined_call_operand.hbm [shape: bf16[1024,256], index: 1, kind: input, shape index: {}]   ;;  %s1861_s2 = inlined_call_operand.vmem [shape: f32[1,256], index: 2, kind: input, shape index: {}]   ;;  %s1862_s3 = inlined_call_operand.hbm [shape: bf16[256,128], index: 3, kind: input, shape index: {}]   ;;  %s1863_s4 = inlined_call_operand.vmem [shape: f32[1,128], index: 4, kind: input, shape index: {}]   ;;  %s1864_s5 = inlined_call_operand.hbm [shape: f32[2,128], index: 5, kind: output, shape index: {}]  }
   0x1   :  { %11 = vsyncpa [#allocation6], 0 }
   0x2   :  { %12 = vsyncpa [#allocation4], 0  ;;  %s1751_s18 = smov [#allocation5]   ;;  %s1657_s22 = scalar_lea.hbm %s1860_s1, 16384 }
   0x3   :  { %s28_s19 = sshll.u32 %s1751_s18, 4  ;;  %p1658_p0 = scmp.ne.s32.totalorder %s1860_s1, %s1657_s22  ;;  %s29_s19 = int_to_ptr.vmem [resolvable:$true] %s28_s19 }
   0x4   :  { %p1661_p1 = scmp.lt.u32.totalorder %s1657_s22, %s1860_s1 }
   0x6   :  { %p1663_p2 = pnand %p1661_p1, %p1658_p0 }
   0x8   :  { %1666 = shalt.err (!%p1663_p2)
}
   0x9   :  { %s1667_s27 = scalar_lea.vmem %s29_s19, 16384  ;;  %p1672_p4 = scmp.lt.s32.totalorder %s29_s19, %s29_s19 }
   0xa   :  { %p1668_p3 = scmp.ne.s32.totalorder %s29_s19, %s1667_s27  ;;  %p1673_p5 = scmp.lt.s32.totalorder %s1667_s27, %s1667_s27 }
   0xc   :  { %p1674_p6 = por %p1673_p5, %p1672_p4 }
   0xe   :  { %p1675_p7 = pnand %p1674_p6, %p1668_p3 }
  0x10   :  { %1678 = shalt.err (!%p1675_p7)
}
  0x11   :  { %s1752_s28 = smov 128   ;;  %s1753_s29 = smov 8  }
  0x12   :  { %34 = dma.hbm_to_vmem [thread:$0]  %s1860_s1, 16384, %s29_s19, [#allocation6], %s1752_s28, %s1752_s28, %s1753_s29  }
  0x13   :  { %s1754_s7 = smov [#allocation2]   ;;  %s1755_s9 = smov [#allocation7]  }
  0x14   :  { %s19_s8 = sshll.u32 %s1754_s7, 4  ;;  %s42_s10 = sshll.u32 %s1755_s9, 4  ;;  %s20_s8 = int_to_ptr.vmem [resolvable:$true] %s19_s8  ;;  %s43_s10 = int_to_ptr.vmem [resolvable:$true] %s42_s10 }
  0x15   :  { %s1679_s13 = scalar_lea.hbm %s1859_s0, 128 }
  0x16   :  { %p1680_p8 = scmp.ne.s32.totalorder %s1859_s0, %s1679_s13  ;;  %p1683_p9 = scmp.lt.u32.totalorder %s1679_s13, %s1859_s0 }
  0x18   :  { %p1685_p10 = pnand %p1683_p9, %p1680_p8 }
  0x1a   :  { %1688 = shalt.err (!%p1685_p10)
}
  0x1b   :  { %s1689_s1 = scalar_lea.vmem %s20_s8, 128  ;;  %p1694_p12 = scmp.lt.s32.totalorder %s20_s8, %s20_s8 }
  0x1c   :  { %p1690_p11 = scmp.ne.s32.totalorder %s20_s8, %s1689_s1  ;;  %p1695_p13 = scmp.lt.s32.totalorder %s1689_s1, %s1689_s1 }
  0x1e   :  { %p1696_p0 = por %p1695_p13, %p1694_p12 }
  0x20   :  { %p1697_p1 = pnand %p1696_p0, %p1690_p11 }
  0x22   :  { %1700 = shalt.err (!%p1697_p1)
}
  0x23   :  { %22 = dma.hbm_to_vmem [thread:$0]  %s1859_s0, 128, %s20_s8, [#allocation3]  }
  0x24   :  { %s1701_s22 = scalar_lea.hbm %s1862_s3, 2048 }
  0x25   :  { %p1702_p2 = scmp.ne.s32.totalorder %s1862_s3, %s1701_s22  ;;  %p1705_p3 = scmp.lt.u32.totalorder %s1701_s22, %s1862_s3 }
  0x27   :  { %p1707_p4 = pnand %p1705_p3, %p1702_p2 }
  0x29   :  { %1710 = shalt.err (!%p1707_p4)
}
  0x2a   :  { %s1711_s27 = scalar_lea.vmem %s43_s10, 2048  ;;  %p1716_p6 = scmp.lt.s32.totalorder %s43_s10, %s43_s10 }
  0x2b   :  { %p1712_p5 = scmp.ne.s32.totalorder %s43_s10, %s1711_s27  ;;  %p1717_p7 = scmp.lt.s32.totalorder %s1711_s27, %s1711_s27 }
  0x2d   :  { %p1718_p8 = por %p1717_p7, %p1716_p6 }
  0x2f   :  { %p1719_p9 = pnand %p1718_p8, %p1712_p5 }
  0x31   :  { %1722 = shalt.err (!%p1719_p9)
}
  0x32   :  { %s1756_s0 = smov 64   ;;  %s1757_s28 = smov 4  }
  0x33   :  { %48 = dma.hbm_to_vmem [thread:$0]  %s1862_s3, 2048, %s43_s10, [#allocation6], %s1756_s0, %s1756_s0, %s1757_s28  }
  0x34   :  { %1745 = dma.done.wait [#allocation3], 128  }
  0x35   :  { %1746 = vsyncadd [#allocation3], 4294967168 }
  0x36   :  { %1747 = dma.done.wait [#allocation6], 18432  }
  0x37   :  { %1748 = vsyncadd [#allocation6], 4294948864  ;;  %v1448_v0 = vld [vmem:[#allocation5 + $0x4] ss:$8 sps:$4 sm:$0xff]   ;;  %v1452_v2 = vld [vmem:[#allocation5] ss:$8 sps:$4 sm:$0xff]   ;;  %v192_v36 = vlaneseq }
  0x38   :  { %v1450_v1 = vld [vmem:[#allocation5 + $0x204] ss:$8 sps:$4 sm:$0xff]   ;;  %900 = vmatprep.subr.bf16.mxu1 %v1448_v0  ;;  %v1453_v3 = vld [vmem:[#allocation5 + $0x200] ss:$8 sps:$4 sm:$0xff]   ;;  %v1454_v4 = vld [vmem:[#allocation5 + $0x14] ss:$8 sps:$4 sm:$0xff]  }
  0x39   :  { %982 = vmatprep.subr.bf16.mxu0 %v1450_v1  ;;  %901 = vmatpush1.bf16.msra.mxu1 %v1452_v2  ;;  %v1456_v5 = vld [vmem:[#allocation5 + $0x214] ss:$8 sps:$4 sm:$0xff]   ;;  %v1458_v6 = vld [vmem:[#allocation5 + $0x10] ss:$8 sps:$4 sm:$0xff]   ;;  %v1460_v8 = vld [vmem:[#allocation5 + $0x24] ss:$8 sps:$4 sm:$0xff]  }
  0x3a   :  { %983 = vmatpush1.bf16.msra.mxu0 %v1453_v3  ;;  %902 = vmatprep.subr.bf16.mxu1 %v1454_v4  ;;  %v1459_v7 = vld [vmem:[#allocation5 + $0x210] ss:$8 sps:$4 sm:$0xff]   ;;  %v1462_v9 = vld [vmem:[#allocation5 + $0x224] ss:$8 sps:$4 sm:$0xff]   ;;  %v1464_v10 = vld [vmem:[#allocation5 + $0x20] ss:$8 sps:$4 sm:$0xff]  }
  0x3b   :  { %984 = vmatprep.subr.bf16.mxu0 %v1456_v5  ;;  %v1465_v11 = vld [vmem:[#allocation5 + $0x220] ss:$8 sps:$4 sm:$0xff]   ;;  %v1466_v12 = vld [vmem:[#allocation5 + $0x34] ss:$8 sps:$4 sm:$0xff]   ;;  %v1470_v14 = vld [vmem:[#allocation5 + $0x30] ss:$8 sps:$4 sm:$0xff]  }
  0x3c   :  { %v1468_v13 = vld [vmem:[#allocation5 + $0x234] ss:$8 sps:$4 sm:$0xff]   ;;  %v1471_v15 = vld [vmem:[#allocation5 + $0x230] ss:$8 sps:$4 sm:$0xff]   ;;  %v1472_v16 = vld [vmem:[#allocation5 + $0x44] ss:$8 sps:$4 sm:$0xff]  }
  0x3d   :  { %903 = vmatpush1.bf16.msra.mxu1 %v1458_v6  ;;  %v1474_v17 = vld [vmem:[#allocation5 + $0x244] ss:$8 sps:$4 sm:$0xff]   ;;  %v1476_v18 = vld [vmem:[#allocation5 + $0x40] ss:$8 sps:$4 sm:$0xff]   ;;  %v1478_v20 = vld [vmem:[#allocation5 + $0x54] ss:$8 sps:$4 sm:$0xff]  }
  0x3e   :  { %985 = vmatpush1.bf16.msra.mxu0 %v1459_v7  ;;  %904 = vmatprep.subr.bf16.mxu1 %v1460_v8  ;;  %v1477_v19 = vld [vmem:[#allocation5 + $0x240] ss:$8 sps:$4 sm:$0xff]   ;;  %v1480_v21 = vld [vmem:[#allocation5 + $0x254] ss:$8 sps:$4 sm:$0xff]   ;;  %v1482_v22 = vld [vmem:[#allocation5 + $0x50] ss:$8 sps:$4 sm:$0xff]  }
  0x3f   :  { %986 = vmatprep.subr.bf16.mxu0 %v1462_v9  ;;  %v1483_v23 = vld [vmem:[#allocation5 + $0x250] ss:$8 sps:$4 sm:$0xff]   ;;  %v1484_v24 = vld [vmem:[#allocation5 + $0x64] ss:$8 sps:$4 sm:$0xff]   ;;  %v1488_v26 = vld [vmem:[#allocation5 + $0x60] ss:$8 sps:$4 sm:$0xff]  }
  0x40   :  { %v1486_v25 = vld [vmem:[#allocation5 + $0x264] ss:$8 sps:$4 sm:$0xff]   ;;  %v1489_v27 = vld [vmem:[#allocation5 + $0x260] ss:$8 sps:$4 sm:$0xff]   ;;  %v1490_v28 = vld [vmem:[#allocation5 + $0x74] ss:$8 sps:$4 sm:$0xff]  }
  0x41   :  { %905 = vmatpush1.bf16.msra.mxu1 %v1464_v10  ;;  %v1492_v29 = vld [vmem:[#allocation5 + $0x274] ss:$8 sps:$4 sm:$0xff]   ;;  %v1494_v30 = vld [vmem:[#allocation5 + $0x70] ss:$8 sps:$4 sm:$0xff]   ;;  %v1496_v32 = vld [vmem:[#allocation5 + $0x84] ss:$8 sps:$4 sm:$0xff]  }
  0x42   :  { %987 = vmatpush1.bf16.msra.mxu0 %v1465_v11  ;;  %906 = vmatprep.subr.bf16.mxu1 %v1466_v12  ;;  %v1495_v31 = vld [vmem:[#allocation5 + $0x270] ss:$8 sps:$4 sm:$0xff]   ;;  %v1498_v33 = vld [vmem:[#allocation5 + $0x284] ss:$8 sps:$4 sm:$0xff]   ;;  %v1500_v34 = vld [vmem:[#allocation5 + $0x80] ss:$8 sps:$4 sm:$0xff]  }
  0x43   :  { %988 = vmatprep.subr.bf16.mxu0 %v1468_v13  ;;  %v1501_v35 = vld [vmem:[#allocation5 + $0x280] ss:$8 sps:$4 sm:$0xff]   ;;  %v1758_v37 = vmov 1966171168   ;;  %v1502_v39 = vld [vmem:[#allocation5 + $0x94] ss:$8 sps:$4 sm:$0xff]  }
  0x44   :  { %v205_v38 = vunpack.c.l.s4 %v1758_v37  ;;  %v1504_v40 = vld [vmem:[#allocation5 + $0x294] ss:$8 sps:$4 sm:$0xff]   ;;  %v1506_v41 = vld [vmem:[#allocation5 + $0x90] ss:$8 sps:$4 sm:$0xff]   ;;  %v1826_v42 = vshrl.u32 %v192_v36, 7  ;;  %s1759_s8 = smov [#allocation8]  }
  0x45   :  { %907 = vmatpush1.bf16.msra.mxu1 %v1470_v14  ;;  %v1507_v44 = vld [vmem:[#allocation5 + $0x290] ss:$8 sps:$4 sm:$0xff]   ;;  %v1508_v45 = vld [vmem:[#allocation5 + $0xa4] ss:$8 sps:$4 sm:$0xff]   ;;  %v1512_v47 = vld [vmem:[#allocation5 + $0xa0] ss:$8 sps:$4 sm:$0xff]  }
  0x46   :  { %989 = vmatpush1.bf16.msra.mxu0 %v1471_v15  ;;  %908 = vmatprep.subr.bf16.mxu1 %v1472_v16  ;;  %v206_v43 = vunpack.c.0.s8 %v205_v38  ;;  %v1510_v46 = vld [vmem:[#allocation5 + $0x2a4] ss:$8 sps:$4 sm:$0xff]   ;;  %v1513_v48 = vld [vmem:[#allocation5 + $0x2a0] ss:$8 sps:$4 sm:$0xff]   ;;  %v1514_v50 = vld [vmem:[#allocation5 + $0xb4] ss:$8 sps:$4 sm:$0xff]  }
  0x47   :  { %990 = vmatprep.subr.bf16.mxu0 %v1474_v17  ;;  %v1516_v51 = vld [vmem:[#allocation5 + $0x2b4] ss:$8 sps:$4 sm:$0xff]   ;;  %v1518_v53 = vld [vmem:[#allocation5 + $0xb0] ss:$8 sps:$4 sm:$0xff]   ;;  %v1520_v57 = vld [vmem:[#allocation5 + $0xc4] ss:$8 sps:$4 sm:$0xff]  }
  0x48   :  { %v209_v49 = vsub.s32 %v206_v43, %v1826_v42  ;;  %v61_v52 = vld [vmem:[#allocation2] sm:$0xff]  ;;  %v1522_v58 = vld [vmem:[#allocation5 + $0x2c4] ss:$8 sps:$4 sm:$0xff]   ;;  %v1524_v61 = vld [vmem:[#allocation5 + $0xc0] ss:$8 sps:$4 sm:$0xff]   ;;  %s1250_s9 = sshll.u32 %s1759_s8, 4  ;;  %s1251_s9 = int_to_ptr.vmem [resolvable:$true] %s1250_s9 }
  0x49   :  { %909 = vmatpush1.bf16.msra.mxu1 %v1476_v18  ;;  %v203_v55 = vcombine.high %v61_v52, %v61_v52  ;;  %v1519_v56 = vld [vmem:[#allocation5 + $0x2b0] ss:$8 sps:$4 sm:$0xff]   ;;  %v1525_v0 = vld [vmem:[#allocation5 + $0x2c0] ss:$8 sps:$4 sm:$0xff]   ;;  %v1526_v1 = vld [vmem:[#allocation5 + $0xd4] ss:$8 sps:$4 sm:$0xff]   ;;  %p1728_p11 = scmp.lt.s32.totalorder %s1251_s9, %s1251_s9 }
  0x4a   :  { %991 = vmatpush1.bf16.msra.mxu0 %v1477_v19  ;;  %910 = vmatprep.subr.bf16.mxu1 %v1478_v20  ;;  %v210_v54 = vrot.slane %v61_v52, %v209_v49  ;;  %v1528_v2 = vld [vmem:[#allocation5 + $0x2d4] ss:$8 sps:$4 sm:$0xff]   ;;  %v1530_v4 = vld [vmem:[#allocation5 + $0xd0] ss:$8 sps:$4 sm:$0xff]   ;;  %v1532_v6 = vld [vmem:[#allocation5 + $0xe4] ss:$8 sps:$4 sm:$0xff]  }
  0x4b   :  { %992 = vmatprep.subr.bf16.mxu0 %v1480_v21  ;;  %v217_v60 = vrot.slane %v203_v55, %v209_v49  ;;  %v1531_v5 = vld [vmem:[#allocation5 + $0x2d0] ss:$8 sps:$4 sm:$0xff]   ;;  %v1534_v7 = vld [vmem:[#allocation5 + $0x2e4] ss:$8 sps:$4 sm:$0xff]   ;;  %v1536_v8 = vld [vmem:[#allocation5 + $0xe0] ss:$8 sps:$4 sm:$0xff]  }
  0x4c   :  { %v218_v59 = vcombine.high %v210_v54, %v210_v54  ;;  %v1537_v9 = vld [vmem:[#allocation5 + $0x2e0] ss:$8 sps:$4 sm:$0xff]   ;;  %v1538_v10 = vld [vmem:[#allocation5 + $0xf4] ss:$8 sps:$4 sm:$0xff]   ;;  %v1542_v12 = vld [vmem:[#allocation5 + $0xf0] ss:$8 sps:$4 sm:$0xff]   ;;  %v1829_v17 = vrot.slane %v210_v54, %v209_v49 }
  0x4d   :  { %911 = vmatpush1.bf16.msra.mxu1 %v1482_v22  ;;  %v219_v63 = vcombine.high %v217_v60, %v217_v60  ;;  %v1540_v11 = vld [vmem:[#allocation5 + $0x2f4] ss:$8 sps:$4 sm:$0xff]   ;;  %v1543_v13 = vld [vmem:[#allocation5 + $0x2f0] ss:$8 sps:$4 sm:$0xff]   ;;  %v1546_v14 = vld [vmem:[#allocation5 + $0x104] ss:$8 sps:$4 sm:$0xff]   ;;  %v1831_v18 = vrot.slane %v217_v60, %v209_v49 }
  0x4e   :  { %993 = vmatpush1.bf16.msra.mxu0 %v1483_v23  ;;  %912 = vmatprep.subr.bf16.mxu1 %v1484_v24  ;;  %v240_v62 = vrot.slane %v218_v59, %v209_v49  ;;  %v1550_v15 = vld [vmem:[#allocation5 + $0x304] ss:$8 sps:$4 sm:$0xff]   ;;  %v1544_v16 = vld [vmem:[#allocation5 + $0x100] ss:$8 sps:$4 sm:$0xff]   ;;  %v1553_v20 = vld [vmem:[#allocation5 + $0x114] ss:$8 sps:$4 sm:$0xff]  }
  0x4f   :  { %994 = vmatprep.subr.bf16.mxu0 %v1486_v25  ;;  %v247_v3 = vrot.slane %v219_v63, %v209_v49  ;;  %v1548_v19 = vld [vmem:[#allocation5 + $0x300] ss:$8 sps:$4 sm:$0xff]   ;;  %v1556_v21 = vld [vmem:[#allocation5 + $0x314] ss:$8 sps:$4 sm:$0xff]   ;;  %v1551_v24 = vld [vmem:[#allocation5 + $0x110] ss:$8 sps:$4 sm:$0xff]  }
  0x50   :  { %932 = vmatprep.mubr.bf16.mxu1 %v240_v62  ;;  %v250_v22 = vcombine.high %v240_v62, %v240_v62  ;;  %v1554_v25 = vld [vmem:[#allocation5 + $0x310] ss:$8 sps:$4 sm:$0xff]   ;;  %v1569_v36 = vld [vmem:[#allocation5 + $0x140] ss:$8 sps:$4 sm:$0xff]   ;;  %v1577_v38 = vld [vmem:[#allocation5 + $0x154] ss:$8 sps:$4 sm:$0xff]  }
  0x51   :  { %913 = vmatpush1.bf16.msra.mxu1 %v1488_v26  ;;  %1014 = vmatprep.mubr.bf16.mxu0 %v247_v3  ;;  %v251_v23 = vcombine.high %v247_v3, %v247_v3  ;;  %v1559_v26 = vld [vmem:[#allocation5 + $0x124] ss:$8 sps:$4 sm:$0xff]   ;;  %v1572_v37 = vld [vmem:[#allocation5 + $0x340] ss:$8 sps:$4 sm:$0xff]   ;;  %v1587_v49 = vld [vmem:[#allocation5 + $0x170] ss:$8 sps:$4 sm:$0xff]  }
  0x52   :  { %995 = vmatpush1.bf16.msra.mxu0 %v1489_v27  ;;  %914 = vmatprep.subr.bf16.mxu1 %v1490_v28  ;;  %v1562_v27 = vld [vmem:[#allocation5 + $0x324] ss:$8 sps:$4 sm:$0xff]   ;;  %v1557_v28 = vld [vmem:[#allocation5 + $0x120] ss:$8 sps:$4 sm:$0xff]   ;;  %v1601_v55 = vld [vmem:[#allocation5 + $0x194] ss:$8 sps:$4 sm:$0xff]  }
  0x53   :  { %996 = vmatprep.subr.bf16.mxu0 %v1492_v29  ;;  %v1560_v29 = vld [vmem:[#allocation5 + $0x320] ss:$8 sps:$4 sm:$0xff]   ;;  %v1583_v43 = vld [vmem:[#allocation5 + $0x164] ss:$8 sps:$4 sm:$0xff]   ;;  %v1613_v63 = vld [vmem:[#allocation5 + $0x1b4] ss:$8 sps:$4 sm:$0xff]  }
  0x54   :  { %v1598_v52 = vld [vmem:[#allocation5 + $0x384] ss:$8 sps:$4 sm:$0xff]   ;;  %v1596_v54 = vld [vmem:[#allocation5 + $0x380] ss:$8 sps:$4 sm:$0xff]   ;;  %s1723_s10 = scalar_lea.vmem %s1251_s9, 32 }
  0x55   :  { %915 = vmatpush1.bf16.msra.mxu1 %v1494_v30  ;;  %v1565_v30 = vld [vmem:[#allocation5 + $0x134] ss:$8 sps:$4 sm:$0xff]   ;;  %v1607_v59 = vld [vmem:[#allocation5 + $0x1a4] ss:$8 sps:$4 sm:$0xff]   ;;  %v1608_v62 = vld [vmem:[#allocation5 + $0x3a0] ss:$8 sps:$4 sm:$0xff]   ;;  %p1724_p10 = scmp.ne.s32.totalorder %s1251_s9, %s1723_s10  ;;  %p1729_p12 = scmp.lt.s32.totalorder %s1723_s10, %s1723_s10 }
  0x56   :  { %997 = vmatpush1.bf16.msra.mxu0 %v1495_v31  ;;  %916 = vmatprep.subr.bf16.mxu1 %v1496_v32  ;;  %v1568_v31 = vld [vmem:[#allocation5 + $0x334] ss:$8 sps:$4 sm:$0xff]   ;;  %v1563_v32 = vld [vmem:[#allocation5 + $0x130] ss:$8 sps:$4 sm:$0xff]   ;;  %v1610_v60 = vld [vmem:[#allocation5 + $0x3a4] ss:$8 sps:$4 sm:$0xff]  }
  0x57   :  { %998 = vmatprep.subr.bf16.mxu0 %v1498_v33  ;;  %v1566_v33 = vld [vmem:[#allocation5 + $0x330] ss:$8 sps:$4 sm:$0xff]   ;;  %v1619_v3 = vld [vmem:[#allocation5 + $0x1c4] ss:$8 sps:$4 sm:$0xff]   ;;  %p1730_p13 = por %p1729_p12, %p1728_p11 }
  0x59   :  { %917 = vmatpush1.bf16.msra.mxu1 %v1500_v34  ;;  %v1571_v34 = vld [vmem:[#allocation5 + $0x144] ss:$8 sps:$4 sm:$0xff]   ;;  %p1731_p0 = pnand %p1730_p13, %p1724_p10 }
  0x5a   :  { %999 = vmatpush1.bf16.msra.mxu0 %v1501_v35  ;;  %918 = vmatprep.subr.bf16.mxu1 %v1502_v39  ;;  %v1574_v35 = vld [vmem:[#allocation5 + $0x344] ss:$8 sps:$4 sm:$0xff]   ;;  %v1580_v39 = vld [vmem:[#allocation5 + $0x354] ss:$8 sps:$4 sm:$0xff]  }
  0x5b   :  { %1000 = vmatprep.subr.bf16.mxu0 %v1504_v40  ;;  %v1575_v40 = vld [vmem:[#allocation5 + $0x150] ss:$8 sps:$4 sm:$0xff]  }
  0x5d   :  { %919 = vmatpush1.bf16.msra.mxu1 %v1506_v41  ;;  %v1578_v41 = vld [vmem:[#allocation5 + $0x350] ss:$8 sps:$4 sm:$0xff]  }
  0x5e   :  { %1001 = vmatpush1.bf16.msra.mxu0 %v1507_v44  ;;  %920 = vmatprep.subr.bf16.mxu1 %v1508_v45  ;;  %v1586_v44 = vld [vmem:[#allocation5 + $0x364] ss:$8 sps:$4 sm:$0xff]   ;;  %v1581_v45 = vld [vmem:[#allocation5 + $0x160] ss:$8 sps:$4 sm:$0xff]  }
  0x5f   :  { %1002 = vmatprep.subr.bf16.mxu0 %v1510_v46  ;;  %v1584_v46 = vld [vmem:[#allocation5 + $0x360] ss:$8 sps:$4 sm:$0xff]  }
  0x61   :  { %921 = vmatpush1.bf16.msra.mxu1 %v1512_v47  ;;  %v1589_v47 = vld [vmem:[#allocation5 + $0x174] ss:$8 sps:$4 sm:$0xff]  }
  0x62   :  { %1003 = vmatpush1.bf16.msra.mxu0 %v1513_v48  ;;  %922 = vmatprep.subr.bf16.mxu1 %v1514_v50  ;;  %v1592_v48 = vld [vmem:[#allocation5 + $0x374] ss:$8 sps:$4 sm:$0xff]   ;;  %v1590_v50 = vld [vmem:[#allocation5 + $0x370] ss:$8 sps:$4 sm:$0xff]  }
  0x63   :  { %1004 = vmatprep.subr.bf16.mxu0 %v1516_v51  ;;  %v1595_v51 = vld [vmem:[#allocation5 + $0x184] ss:$8 sps:$4 sm:$0xff]  }
  0x65   :  { %923 = vmatpush1.bf16.msra.mxu1 %v1518_v53  ;;  %v1593_v53 = vld [vmem:[#allocation5 + $0x180] ss:$8 sps:$4 sm:$0xff]  }
  0x66   :  { %1005 = vmatpush1.bf16.msra.mxu0 %v1519_v56  ;;  %924 = vmatprep.subr.bf16.mxu1 %v1520_v57  ;;  %v1604_v56 = vld [vmem:[#allocation5 + $0x394] ss:$8 sps:$4 sm:$0xff]   ;;  %v1599_v57 = vld [vmem:[#allocation5 + $0x190] ss:$8 sps:$4 sm:$0xff]  }
  0x67   :  { %1006 = vmatprep.subr.bf16.mxu0 %v1522_v58  ;;  %v1602_v58 = vld [vmem:[#allocation5 + $0x390] ss:$8 sps:$4 sm:$0xff]  }
  0x69   :  { %925 = vmatpush1.bf16.msra.mxu1 %v1524_v61  ;;  %v1605_v61 = vld [vmem:[#allocation5 + $0x1a0] ss:$8 sps:$4 sm:$0xff]  }
  0x6a   :  { %1007 = vmatpush1.bf16.msra.mxu0 %v1525_v0  ;;  %926 = vmatprep.subr.bf16.mxu1 %v1526_v1  ;;  %v1616_v0 = vld [vmem:[#allocation5 + $0x3b4] ss:$8 sps:$4 sm:$0xff]   ;;  %v1611_v1 = vld [vmem:[#allocation5 + $0x1b0] ss:$8 sps:$4 sm:$0xff]  }
  0x6b   :  { %1008 = vmatprep.subr.bf16.mxu0 %v1528_v2  ;;  %v1614_v2 = vld [vmem:[#allocation5 + $0x3b0] ss:$8 sps:$4 sm:$0xff]  }
  0x6d   :  { %927 = vmatpush1.bf16.msra.mxu1 %v1530_v4  ;;  %v1622_v4 = vld [vmem:[#allocation5 + $0x3c4] ss:$8 sps:$4 sm:$0xff]  }
  0x6e   :  { %1009 = vmatpush1.bf16.msra.mxu0 %v1531_v5  ;;  %928 = vmatprep.subr.bf16.mxu1 %v1532_v6  ;;  %v1617_v5 = vld [vmem:[#allocation5 + $0x1c0] ss:$8 sps:$4 sm:$0xff]  }
  0x6f   :  { %1010 = vmatprep.subr.bf16.mxu0 %v1534_v7  ;;  %v1620_v6 = vld [vmem:[#allocation5 + $0x3c0] ss:$8 sps:$4 sm:$0xff]   ;;  %v1625_v7 = vld [vmem:[#allocation5 + $0x1d4] ss:$8 sps:$4 sm:$0xff]  }
  0x71   :  { %929 = vmatpush1.bf16.msra.mxu1 %v1536_v8  ;;  %v1628_v8 = vld [vmem:[#allocation5 + $0x3d4] ss:$8 sps:$4 sm:$0xff]  }
  0x72   :  { %1011 = vmatpush1.bf16.msra.mxu0 %v1537_v9  ;;  %930 = vmatprep.subr.bf16.mxu1 %v1538_v10  ;;  %v1623_v9 = vld [vmem:[#allocation5 + $0x1d0] ss:$8 sps:$4 sm:$0xff]  }
  0x73   :  { %1012 = vmatprep.subr.bf16.mxu0 %v1540_v11  ;;  %v1626_v10 = vld [vmem:[#allocation5 + $0x3d0] ss:$8 sps:$4 sm:$0xff]   ;;  %v1631_v11 = vld [vmem:[#allocation5 + $0x1e4] ss:$8 sps:$4 sm:$0xff]  }
  0x75   :  { %931 = vmatpush1.bf16.msra.mxu1 %v1542_v12  ;;  %v1634_v12 = vld [vmem:[#allocation5 + $0x3e4] ss:$8 sps:$4 sm:$0xff]  }
  0x76   :  { %1013 = vmatpush1.bf16.msra.mxu0 %v1543_v13  ;;  %941 = vmatprep.subr.bf16.mxu1 %v1546_v14  ;;  %v1629_v13 = vld [vmem:[#allocation5 + $0x1e0] ss:$8 sps:$4 sm:$0xff]  }
  0x77   :  { %1023 = vmatprep.subr.bf16.mxu0 %v1550_v15  ;;  %v1632_v14 = vld [vmem:[#allocation5 + $0x3e0] ss:$8 sps:$4 sm:$0xff]   ;;  %v1637_v15 = vld [vmem:[#allocation5 + $0x1f4] ss:$8 sps:$4 sm:$0xff]  }
  0x78   :  { %933 = vmatmul.mubr.bf16.vlgmr.msra.gmra.mrb[0].mxu1 %v1829_v17 }
  0x79   :  { %1015 = vmatmul.mubr.bf16.vlgmr.msra.gmra.mrb[0].mxu0 %v1831_v18  ;;  %942 = vmatpush1.bf16.msra.mxu1 %v1544_v16  ;;  %v1640_v16 = vld [vmem:[#allocation5 + $0x3f4] ss:$8 sps:$4 sm:$0xff]  }
  0x7a   :  { %1024 = vmatpush1.bf16.msra.mxu0 %v1548_v19  ;;  %943 = vmatprep.subr.bf16.mxu1 %v1553_v20  ;;  %v1635_v19 = vld [vmem:[#allocation5 + $0x1f0] ss:$8 sps:$4 sm:$0xff]  }
  0x7b   :  { %1025 = vmatprep.subr.bf16.mxu0 %v1556_v21  ;;  %973 = vmatprep.mubr.bf16.mxu1 %v250_v22  ;;  %v1638_v20 = vld [vmem:[#allocation5 + $0x3f0] ss:$8 sps:$4 sm:$0xff]   ;;  %v1641_v21 = vld [vmem:[#allocation7 + $0x40] sm:$0xff]   ;;  %v248_v22 = vcombine.high %v1829_v17, %v1829_v17 }
  0x7c   :  { %1055 = vmatprep.mubr.bf16.mxu0 %v251_v23  ;;  %v249_v23 = vcombine.high %v1831_v18, %v1831_v18  ;;  %v1648_v17 = vld [vmem:[#allocation7 + $0x18] sm:$0xff]   ;;  %v1650_v18 = vld [vmem:[#allocation7 + $0x20] sm:$0xff]  }
  0x7d   :  { %944 = vmatpush1.bf16.msra.mxu1 %v1551_v24  ;;  %v1642_v24 = vld [vmem:[#allocation7] sm:$0xff]  }
  0x7e   :  { %1026 = vmatpush1.bf16.msra.mxu0 %v1554_v25  ;;  %945 = vmatprep.subr.bf16.mxu1 %v1559_v26  ;;  %v1643_v25 = vld [vmem:[#allocation7 + $0x48] sm:$0xff]  }
  0x7f   :  { %1027 = vmatprep.subr.bf16.mxu0 %v1562_v27  ;;  %v1644_v26 = vld [vmem:[#allocation7 + $0x8] sm:$0xff]   ;;  %v1645_v27 = vld [vmem:[#allocation7 + $0x50] sm:$0xff]  }
  0x81   :  { %946 = vmatpush1.bf16.msra.mxu1 %v1557_v28  ;;  %v1646_v28 = vld [vmem:[#allocation7 + $0x10] sm:$0xff]  }
  0x82   :  { %1028 = vmatpush1.bf16.msra.mxu0 %v1560_v29  ;;  %947 = vmatprep.subr.bf16.mxu1 %v1565_v30  ;;  %v1647_v29 = vld [vmem:[#allocation7 + $0x58] sm:$0xff]   ;;  %v1649_v30 = vld [vmem:[#allocation7 + $0x60] sm:$0xff]  }
  0x83   :  { %1029 = vmatprep.subr.bf16.mxu0 %v1568_v31  ;;  %v1651_v31 = vld [vmem:[#allocation7 + $0x68] sm:$0xff]  }
  0x85   :  { %948 = vmatpush1.bf16.msra.mxu1 %v1563_v32  ;;  %v1652_v32 = vld [vmem:[#allocation7 + $0x28] sm:$0xff]  }
  0x86   :  { %1030 = vmatpush1.bf16.msra.mxu0 %v1566_v33  ;;  %949 = vmatprep.subr.bf16.mxu1 %v1571_v34  ;;  %v1653_v33 = vld [vmem:[#allocation7 + $0x70] sm:$0xff]  }
  0x87   :  { %1031 = vmatprep.subr.bf16.mxu0 %v1574_v35  ;;  %v1654_v34 = vld [vmem:[#allocation7 + $0x30] sm:$0xff]   ;;  %v1655_v35 = vld [vmem:[#allocation7 + $0x78] sm:$0xff]  }
  0x89   :  { %950 = vmatpush1.bf16.msra.mxu1 %v1569_v36  ;;  %v1656_v36 = vld [vmem:[#allocation7 + $0x38] sm:$0xff]  }
  0x8a   :  { %1032 = vmatpush1.bf16.msra.mxu0 %v1572_v37  ;;  %951 = vmatprep.subr.bf16.mxu1 %v1577_v38  ;;  %v194_v37 = vsub.s32 0, %v1826_v42  ;;  %v190_v38 = vld [vmem:[%s1861_s2] sm:$0x3] }
  0x8b   :  { %1033 = vmatprep.subr.bf16.mxu0 %v1580_v39  ;;  %v198_v39 = vsub.s32 1, %v1826_v42 }
  0x8d   :  { %952 = vmatpush1.bf16.msra.mxu1 %v1575_v40  ;;  %v195_v40 = vrot.slane %v190_v38, %v194_v37 }
  0x8e   :  { %1034 = vmatpush1.bf16.msra.mxu0 %v1578_v41  ;;  %953 = vmatprep.subr.bf16.mxu1 %v1583_v43  ;;  %v199_v41 = vrot.slane %v190_v38, %v198_v39 }
  0x8f   :  { %1035 = vmatprep.subr.bf16.mxu0 %v1586_v44 }
  0x91   :  { %954 = vmatpush1.bf16.msra.mxu1 %v1581_v45 }
  0x92   :  { %1036 = vmatpush1.bf16.msra.mxu0 %v1584_v46  ;;  %955 = vmatprep.subr.bf16.mxu1 %v1589_v47 }
  0x93   :  { %1037 = vmatprep.subr.bf16.mxu0 %v1592_v48 }
  0x95   :  { %956 = vmatpush1.bf16.msra.mxu1 %v1587_v49 }
  0x96   :  { %1038 = vmatpush1.bf16.msra.mxu0 %v1590_v50  ;;  %957 = vmatprep.subr.bf16.mxu1 %v1595_v51 }
  0x97   :  { %1039 = vmatprep.subr.bf16.mxu0 %v1598_v52 }
  0x99   :  { %958 = vmatpush1.bf16.msra.mxu1 %v1593_v53 }
  0x9a   :  { %1040 = vmatpush1.bf16.msra.mxu0 %v1596_v54  ;;  %959 = vmatprep.subr.bf16.mxu1 %v1601_v55 }
  0x9b   :  { %1041 = vmatprep.subr.bf16.mxu0 %v1604_v56 }
  0x9d   :  { %960 = vmatpush1.bf16.msra.mxu1 %v1599_v57 }
  0x9e   :  { %1042 = vmatpush1.bf16.msra.mxu0 %v1602_v58  ;;  %961 = vmatprep.subr.bf16.mxu1 %v1607_v59  ;;  %v1388_v59 = vld [vmem:[%s1863_s4] ss:$0 sm:$0xff] }
  0x9f   :  { %1043 = vmatprep.subr.bf16.mxu0 %v1610_v60 }
  0xa1   :  { %962 = vmatpush1.bf16.msra.mxu1 %v1605_v61 }
  0xa2   :  { %1044 = vmatpush1.bf16.msra.mxu0 %v1608_v62  ;;  %963 = vmatprep.subr.bf16.mxu1 %v1613_v63 }
  0xa3   :  { %1045 = vmatprep.subr.bf16.mxu0 %v1616_v0 }
  0xa5   :  { %964 = vmatpush1.bf16.msra.mxu1 %v1611_v1 }
  0xa6   :  { %1046 = vmatpush1.bf16.msra.mxu0 %v1614_v2  ;;  %965 = vmatprep.subr.bf16.mxu1 %v1619_v3 }
  0xa7   :  { %1047 = vmatprep.subr.bf16.mxu0 %v1622_v4 }
  0xa9   :  { %966 = vmatpush1.bf16.msra.mxu1 %v1617_v5 }
  0xaa   :  { %1048 = vmatpush1.bf16.msra.mxu0 %v1620_v6  ;;  %967 = vmatprep.subr.bf16.mxu1 %v1625_v7 }
  0xab   :  { %1049 = vmatprep.subr.bf16.mxu0 %v1628_v8 }
  0xad   :  { %968 = vmatpush1.bf16.msra.mxu1 %v1623_v9 }
  0xae   :  { %1050 = vmatpush1.bf16.msra.mxu0 %v1626_v10  ;;  %969 = vmatprep.subr.bf16.mxu1 %v1631_v11 }
  0xaf   :  { %1051 = vmatprep.subr.bf16.mxu0 %v1634_v12 }
  0xb1   :  { %970 = vmatpush1.bf16.msra.mxu1 %v1629_v13 }
  0xb2   :  { %1052 = vmatpush1.bf16.msra.mxu0 %v1632_v14  ;;  %971 = vmatprep.subr.bf16.mxu1 %v1637_v15 }
  0xb3   :  { %1053 = vmatprep.subr.bf16.mxu0 %v1640_v16 }
  0xb5   :  { %972 = vmatpush1.bf16.msra.mxu1 %v1635_v19 }
  0xb6   :  { %1054 = vmatpush1.bf16.msra.mxu0 %v1638_v20  ;;  %1405 = vmatprep.subr.bf16.mxu1 %v1641_v21 }
  0xb8   :  { %974 = vmatmul.mubr.bf16.vlgmr.msra.gmra.mrb[0].mxu1 %v248_v22 }
  0xb9   :  { %1056 = vmatmul.mubr.bf16.vlgmr.msra.gmra.mrb[0].mxu0 %v249_v23  ;;  %1406 = vmatpush3.bf16.msra.mxu1 %v1642_v24 }
  0xba   :  { %1407 = vmatprep.subr.bf16.mxu1 %v1643_v25 }
  0xbd   :  { %1408 = vmatpush3.bf16.msra.mxu1 %v1644_v26 }
  0xbe   :  { %1409 = vmatprep.subr.bf16.mxu1 %v1645_v27 }
  0xc1   :  { %1410 = vmatpush3.bf16.msra.mxu1 %v1646_v28 }
  0xc2   :  { %1411 = vmatprep.subr.bf16.mxu1 %v1647_v29 }
  0xc5   :  { %1412 = vmatpush3.bf16.msra.mxu1 %v1648_v17 }
  0xc6   :  { %1413 = vmatprep.subr.bf16.mxu1 %v1649_v30 }
  0xc9   :  { %1414 = vmatpush3.bf16.msra.mxu1 %v1650_v18 }
  0xca   :  { %1415 = vmatprep.subr.bf16.mxu1 %v1651_v31 }
  0xcd   :  { %1416 = vmatpush3.bf16.msra.mxu1 %v1652_v32 }
  0xce   :  { %1417 = vmatprep.subr.bf16.mxu1 %v1653_v33 }
  0xd1   :  { %1418 = vmatpush3.bf16.msra.mxu1 %v1654_v34 }
  0xd2   :  { %1419 = vmatprep.subr.bf16.mxu1 %v1655_v35 }
  0xd5   :  { %1420 = vmatpush3.bf16.msra.mxu1 %v1656_v36 }
 0x18b   :  { %v975_v43 = vpop.f32.mrb[0].mxu1 }
 0x18c   :  { %v1057_v44 = vpop.f32.mrb[0].mxu0  ;;  %v1427_v45 = vadd.f32 %v975_v43, %v195_v40  ;;  %v977_v46 = vpop.f32.mrb[1].mxu1 }
 0x18d   :  { %v1059_v47 = vpop.f32.mrb[1].mxu0  ;;  %v1429_v48 = vadd.f32 %v977_v46, %v199_v41  ;;  %v979_v49 = vpop.f32.mrb[2].mxu1 }
 0x18e   :  { %v1061_v50 = vpop.f32.mrb[2].mxu0  ;;  %v1428_v51 = vadd.f32 %v1427_v45, %v1057_v44  ;;  %v980_v52 = vpop.f32.mrb[3].mxu1 }
 0x18f   :  { %v1062_v53 = vpop.f32.mrb[3].mxu0  ;;  %v1430_v54 = vadd.f32 %v1429_v48, %v1059_v47 }
 0x190   :  { %v1064_v55 = vmax.f32 %v1428_v51, 0.0 }
 0x191   :  { %v1065_v56 = vmax.f32 %v1430_v54, 0.0 }
 0x192   :  { %v1066_v58 = vpack.c.bf16 %v1064_v55, %v1064_v55 }
 0x193   :  { %v1067_v57 = vpack.c.bf16 %v1065_v56, %v1065_v56 }
 0x195   :  { %1235 = vmatprep.mubr.bf16.mxu1 %v1067_v57 }
 0x196   :  { %1236 = vmatmul.mubr.bf16.vlgmr.msra.gmra.mrb[4].mxu1 %v1066_v58 }
 0x269   :  { %v1421_v42 = vpop.f32.mrb[4].mxu1 }
 0x26a   :  { %v1422_v60 = vpop.f32.mrb[5].mxu1 }
 0x26b   :  { %v1423_v61 = vadd.f32 %v1422_v60, %v1421_v42  ;;  %v1424_v62 = vpop.f32.mrb[6].mxu1 }
 0x26c   :  { %v1425_v63 = vpop.f32.mrb[7].mxu1 }
 0x26d   :  { %v1238_v0 = vadd.f32 %v1423_v61, %v1388_v59 }
 0x26f   :  { %1243 = vst [vmem:[#allocation8] sm:$0x3] %v1238_v0 }
 0x270   :  { %1734 = shalt.err (!%p1731_p0)
}
 0x271   :  { %s1735_s4 = scalar_lea.hbm %s1864_s5, 32 }
 0x272   :  { %p1736_p1 = scmp.ne.s32.totalorder %s1864_s5, %s1735_s4  ;;  %p1739_p2 = scmp.lt.u32.totalorder %s1735_s4, %s1864_s5 }
 0x274   :  { %p1741_p3 = pnand %p1739_p2, %p1736_p1 }
 0x276   :  { %1744 = shalt.err (!%p1741_p3)
}
 0x277   :  { %1253 = dma.vmem_to_hbm [thread:$0]  %s1251_s9, 32, %s1864_s5, [#allocation4]  }
 0x278   :  { %1749 = dma.done.wait [#allocation4], 32  }
 0x279   :  { %1750 = vsyncadd [#allocation4], 4294967264 }
 0x27a   :  { %1257 = vsyncpa [#allocation3], 1 }
 0x27b   :  { %1258 = vsyncpa [#allocation6], 1 }
 0x27c   :  { %1259 = vsyncpa [#allocation4], 1 }

</bundles_post_ra>
